<compile_context>
chip_gen: v7x
topology: tpu7x:2x2x1
jax: 0.10.0
libtpu: 0.0.40
codegen_flags: <defaults>
</compile_context>

<pallas_src>
import jax
import jax.numpy as jnp
from jax.experimental import pallas as pl
from jax.experimental.pallas import tpu as pltpu

_MIB = 1024 * 1024


def _round_up(x, m):
    return ((x + m - 1) // m) * m


def _vmem_capacity_bytes():
    try:
        return int(pltpu.get_tpu_info().vmem_capacity_bytes)
    except Exception:
        return 64 * _MIB  # conservative fallback (v7x per-TC capacity)


def _choose_tiles(rows, cols, num_channels, itemsize, budget):
    """Pick a lane-dense (TM, TN) whose double-buffered set fits `budget`."""
    sub = max(8, 32 // itemsize)   # sublane packing multiple: f32->8, bf16->16, int8->32
    lane = 128

    # Lane (last) axis: full-dim block when small, otherwise a multiple of 128
    # (partial edge block handled by the cdiv grid).
    tn = cols if cols <= lane else min(512, _round_up(cols, lane))
    # Sublane (second-last) axis: full-dim block when small, else multiple of `sub`.
    tm = rows if rows <= sub else min(1024, _round_up(rows, sub))

    def working_set(tm_, tn_):
        # 2 pipeline buffers per array, C inputs + 1 output.
        return 2 * (num_channels + 1) * tm_ * tn_ * itemsize

    # Shrink rows first (keeps stores lane-dense), then columns.
    while working_set(tm, tn) > budget and tm > sub:
        tm = max(sub, (tm // 2) // sub * sub)
    while working_set(tm, tn) > budget and tn > lane:
        tn = max(lane, (tn // 2) // lane * lane)
    return tm, tn


def _make_kernel(num_channels):
    """Build a kernel closed over the (static) channel count."""

    def kernel(w_ref, *refs):
        # w_ref:     (C,) float32 in SMEM (scalar prefetch)
        # refs[:C]:  (TM, TN) VMEM adjacency tiles, one per channel
        # refs[C]:   (TM, TN) VMEM output tile
        adj_refs = refs[:num_channels]
        out_ref = refs[num_channels]
        # Unrolled weighted accumulation: C scalar*vector multiply-adds on the
        # VPU, accumulated in float32 (matches torch's float promotion).
        acc = adj_refs[0][...].astype(jnp.float32) * w_ref[0]
        for c in range(1, num_channels):
            acc = acc + adj_refs[c][...].astype(jnp.float32) * w_ref[c]
        out_ref[...] = acc.astype(out_ref.dtype)

    return kernel


def graph_channel_att_layer(adj_list, weight):
    """Pallas equivalent of GraphChannelAttLayer.forward.

    adj_list: list of C arrays, each (B, N, N).
    weight:   (C, 1, 1) per-channel scalars.
    Returns:  (B, N, N) = sum_c weight[c] * adj_list[c].
    """
    C = len(adj_list)
    B, N, N2 = adj_list[0].shape
    assert N == N2, "adjacency matrices must be square"
    adj_dtype = adj_list[0].dtype
    itemsize = jnp.dtype(adj_dtype).itemsize
    # Match PyTorch promotion: adj * float32 weight -> at least float32.
    out_dtype = jnp.result_type(adj_dtype, jnp.float32)

    # Flatten batch into the row axis (contiguous reshape, no HBM copy).
    rows, cols = B * N, N
    flat_adjs = [a.reshape(rows, cols) for a in adj_list]

    capacity = _vmem_capacity_bytes()
    budget = min(48 * _MIB, int(capacity * 0.4))            # double-buffered set
    vmem_limit = int(min(100 * _MIB, capacity * 3 // 4))    # scoped VMEM limit

    TM, TN = _choose_tiles(rows, cols, C, itemsize, budget)
    grid = (pl.cdiv(rows, TM), pl.cdiv(cols, TN))

    w_flat = weight.reshape(C).astype(jnp.float32)

    # index_map receives the scalar-prefetch ref as a trailing positional arg.
    tile_spec = pl.BlockSpec((TM, TN), lambda i, j, w: (i, j))

    out = pl.pallas_call(
        _make_kernel(C),
        out_shape=jax.ShapeDtypeStruct((rows, cols), out_dtype),
        grid_spec=pltpu.PrefetchScalarGridSpec(
            num_scalar_prefetch=1,          # per-channel weights -> SMEM
            grid=grid,
            in_specs=[tile_spec] * C,       # one lane-dense tile per channel
            out_specs=tile_spec,
        ),
        compiler_params=pltpu.CompilerParams(
            dimension_semantics=("parallel", "parallel"),
            vmem_limit_bytes=vmem_limit,
        ),
        cost_estimate=pl.CostEstimate(
            flops=2 * C * rows * cols,
            transcendentals=0,
            bytes_accessed=C * rows * cols * itemsize
            + rows * cols * jnp.dtype(out_dtype).itemsize,
        ),
    )(w_flat, *flat_adjs)

    return out.reshape(B, N, N)


if __name__ == "__main__":
    key = jax.random.PRNGKey(0)

    B, C, N = 2, 4, 16

    # adj_list: C adjacency tensors of shape (B, N, N).
    keys = jax.random.split(key, C + 1)
    adj_list = [jax.random.normal(k, (B, N, N), dtype=jnp.float32) for k in keys[:C]]

    # 1) Default init: nn.init.constant_(weight, 1).
    weight_ones = jnp.ones((C, 1, 1), dtype=jnp.float32)
    out = jax.block_until_ready(graph_channel_att_layer(adj_list, weight_ones))
    ref = sum(weight_ones[c, 0, 0] * adj_list[c] for c in range(C))
    assert out.shape == (B, N, N)
    assert jnp.allclose(out, ref, atol=1e-5, rtol=1e-5)

    # 2) Non-trivial weights to exercise the per-channel scaling path.
    weight_rnd = jax.random.normal(keys[C], (C, 1, 1), dtype=jnp.float32)
    out2 = jax.block_until_ready(graph_channel_att_layer(adj_list, weight_rnd))
    ref2 = sum(weight_rnd[c, 0, 0] * adj_list[c] for c in range(C))
    assert jnp.allclose(out2, ref2, atol=1e-5, rtol=1e-5)

    print("KERNEL_OK")
</pallas_src>

<mosaic_0001>
module attributes {stable_mosaic.version = 11 : i64} {
  func.func @kernel(%arg0: i32, %arg1: i32, %arg2: memref<4xf32, #tpu.memory_space<smem>>, %arg3: memref<32x16xf32, #tpu.memory_space<vmem>>, %arg4: memref<32x16xf32, #tpu.memory_space<vmem>>, %arg5: memref<32x16xf32, #tpu.memory_space<vmem>>, %arg6: memref<32x16xf32, #tpu.memory_space<vmem>>, %arg7: memref<32x16xf32, #tpu.memory_space<vmem>>) attributes {dimension_semantics = [#tpu.dimension_semantics<parallel>, #tpu.dimension_semantics<parallel>], iteration_bounds = array<i64: 1, 1>, scalar_prefetch = 1 : i64, scratch_operands = 0 : i64, tpu.core_type = #tpu.core_type<tc>, window_params = [{transform_indices = @transform_0, window_bounds = array<i64: 32, 16>}, {transform_indices = @transform_1, window_bounds = array<i64: 32, 16>}, {transform_indices = @transform_2, window_bounds = array<i64: 32, 16>}, {transform_indices = @transform_3, window_bounds = array<i64: 32, 16>}, {transform_indices = @transform_4, window_bounds = array<i64: 32, 16>}]} {
    %c0 = arith.constant 0 : index
    %c0_0 = arith.constant 0 : index
    %0 = vector.load %arg3[%c0, %c0_0] : memref<32x16xf32, #tpu.memory_space<vmem>>, vector<32x16xf32>
    %c0_1 = arith.constant 0 : index
    %1 = memref.load %arg2[%c0_1] : memref<4xf32, #tpu.memory_space<smem>>
    %2 = vector.broadcast %1 : f32 to vector<32x16xf32>
    %3 = arith.mulf %0, %2 : vector<32x16xf32>
    %c0_2 = arith.constant 0 : index
    %c0_3 = arith.constant 0 : index
    %4 = vector.load %arg4[%c0_2, %c0_3] : memref<32x16xf32, #tpu.memory_space<vmem>>, vector<32x16xf32>
    %c1 = arith.constant 1 : index
    %5 = memref.load %arg2[%c1] : memref<4xf32, #tpu.memory_space<smem>>
    %6 = vector.broadcast %5 : f32 to vector<32x16xf32>
    %7 = arith.mulf %4, %6 : vector<32x16xf32>
    %8 = arith.addf %3, %7 : vector<32x16xf32>
    %c0_4 = arith.constant 0 : index
    %c0_5 = arith.constant 0 : index
    %9 = vector.load %arg5[%c0_4, %c0_5] : memref<32x16xf32, #tpu.memory_space<vmem>>, vector<32x16xf32>
    %c2 = arith.constant 2 : index
    %10 = memref.load %arg2[%c2] : memref<4xf32, #tpu.memory_space<smem>>
    %11 = vector.broadcast %10 : f32 to vector<32x16xf32>
    %12 = arith.mulf %9, %11 : vector<32x16xf32>
    %13 = arith.addf %8, %12 : vector<32x16xf32>
    %c0_6 = arith.constant 0 : index
    %c0_7 = arith.constant 0 : index
    %14 = vector.load %arg6[%c0_6, %c0_7] : memref<32x16xf32, #tpu.memory_space<vmem>>, vector<32x16xf32>
    %c3 = arith.constant 3 : index
    %15 = memref.load %arg2[%c3] : memref<4xf32, #tpu.memory_space<smem>>
    %16 = vector.broadcast %15 : f32 to vector<32x16xf32>
    %17 = arith.mulf %14, %16 : vector<32x16xf32>
    %18 = arith.addf %13, %17 : vector<32x16xf32>
    %c0_8 = arith.constant 0 : index
    %c0_9 = arith.constant 0 : index
    %19 = vector.load %arg7[%c0_8, %c0_9] : memref<32x16xf32, #tpu.memory_space<vmem>>, vector<32x16xf32>
    tpu.vector_store %arg7[%c0_8, %c0_9], %18 {strides = array<i32>} : memref<32x16xf32, #tpu.memory_space<vmem>>, vector<32x16xf32>,
    return
  }
  func.func @transform_0(%arg0: i32, %arg1: i32, %arg2: memref<4xf32, #tpu.memory_space<smem>>) -> (i32, i32) {
    %c0_i32 = arith.constant 0 : i32
    return %arg0, %arg1 : i32, i32
  }
  func.func @transform_1(%arg0: i32, %arg1: i32, %arg2: memref<4xf32, #tpu.memory_space<smem>>) -> (i32, i32) {
    %c0_i32 = arith.constant 0 : i32
    return %arg0, %arg1 : i32, i32
  }
  func.func @transform_2(%arg0: i32, %arg1: i32, %arg2: memref<4xf32, #tpu.memory_space<smem>>) -> (i32, i32) {
    %c0_i32 = arith.constant 0 : i32
    return %arg0, %arg1 : i32, i32
  }
  func.func @transform_3(%arg0: i32, %arg1: i32, %arg2: memref<4xf32, #tpu.memory_space<smem>>) -> (i32, i32) {
    %c0_i32 = arith.constant 0 : i32
    return %arg0, %arg1 : i32, i32
  }
  func.func @transform_4(%arg0: i32, %arg1: i32, %arg2: memref<4xf32, #tpu.memory_space<smem>>) -> (i32, i32) {
    %c0_i32 = arith.constant 0 : i32
    return %arg0, %arg1 : i32, i32
  }
}

</mosaic_0001>

<bundles_post_ra>
// kernel: tpu_custom_call.1
= control target key start
LH: loop header
LB: loop body
LE: loop exit
PB: predicated region body
PF: predicated region fallthrough
CT: control target
= control target key end

     0   :  { %s197_s0 = inlined_call_operand.vmem [shape: f32[4], index: 0, kind: input, shape index: {}]   ;;  %s198_s1 = inlined_call_operand.vmem [shape: f32[32,16], index: 1, kind: input, shape index: {}]   ;;  %s199_s2 = inlined_call_operand.vmem [shape: f32[32,16], index: 2, kind: input, shape index: {}]   ;;  %s200_s3 = inlined_call_operand.vmem [shape: f32[32,16], index: 3, kind: input, shape index: {}]   ;;  %s201_s4 = inlined_call_operand.vmem [shape: f32[32,16], index: 4, kind: input, shape index: {}]   ;;  %s202_s5 = inlined_call_operand.vmem [shape: f32[32,16], index: 5, kind: output, shape index: {}]  }
   0x1   :  { %s10_s20 = sshll.u32 %s197_s0, 4  ;;  %s11_s20 = int_to_ptr.vmem [resolvable:$true] %s10_s20 }
   0x2   :  { %s89_s21 = scalar_lea.vmem %s11_s20, 16  ;;  %p94_p1 = scmp.lt.s32.totalorder %s11_s20, %s11_s20 }
   0x3   :  { %p90_p0 = scmp.ne.s32.totalorder %s11_s20, %s89_s21  ;;  %p95_p2 = scmp.lt.s32.totalorder %s89_s21, %s89_s21 }
   0x5   :  { %p96_p3 = por %p95_p2, %p94_p1 }
   0x7   :  { %p97_p4 = pnand %p96_p3, %p90_p0 }
   0x9   :  { %100 = shalt.err (!%p97_p4)  }
   0xa   :  { %s103_s22 = smov [#allocation3]  }
   0xb   :  { %13 = dma.vmem_to_smem %s11_s20, 16, %s103_s22, [#allocation2] }
   0xc   :  { %101 = dma.done.wait [#allocation2], 16 }
   0xd   :  { %102 = vsyncadd [#allocation2], 4294967280 }
   0xe   :  { %15 = sfence }
   0xf   :  { %s28_s23 = sld [smem:[#allocation3]]  ;;  %s85_s24 = sld [smem:[#allocation3 + $0x1]]  ;;  %v24_v0 = vld [vmem:[%s198_s1] sm:$0xff]  ;;  %v25_v4 = vld [vmem:[%s198_s1 + $0x8] sm:$0xff]  ;;  %v26_v10 = vld [vmem:[%s198_s1 + $0x10] sm:$0xff]  ;;  %vm76_vm0 = vcmask 130048  }
  0x10   :  { %s86_s25 = sld [smem:[#allocation3 + $0x2]]  ;;  %s87_s26 = sld [smem:[#allocation3 + $0x3]]  ;;  %v34_v1 = vld [vmem:[%s199_s2] sm:$0xff]  ;;  %v35_v5 = vld [vmem:[%s199_s2 + $0x8] sm:$0xff]  ;;  %v36_v15 = vld [vmem:[%s199_s2 + $0x10] sm:$0xff] }
  0x11   :  { %v48_v2 = vld [vmem:[%s200_s3] sm:$0xff]  ;;  %v49_v6 = vld [vmem:[%s200_s3 + $0x8] sm:$0xff]  ;;  %v50_v16 = vld [vmem:[%s200_s3 + $0x10] sm:$0xff] }
  0x12   :  { %v62_v3 = vld [vmem:[%s201_s4] sm:$0xff]  ;;  %v63_v9 = vld [vmem:[%s201_s4 + $0x8] sm:$0xff]  ;;  %v27_v20 = vld [vmem:[%s198_s1 + $0x18] sm:$0xff] }
  0x13   :  { %v37_v21 = vld [vmem:[%s199_s2 + $0x18] sm:$0xff]  ;;  %v64_v27 = vld [vmem:[%s201_s4 + $0x10] sm:$0xff] }
  0x14   :  { %v51_v22 = vld [vmem:[%s200_s3 + $0x18] sm:$0xff] }
  0x15   :  { %v29_v7 = vstv %s28_s23  ;;  %v39_v8 = vstv %s85_s24  ;;  %v65_v32 = vld [vmem:[%s201_s4 + $0x18] sm:$0xff] }
  0x16   :  { %v30_v11 = vmul.f32 %v29_v7, %v24_v0  ;;  %v40_v12 = vmul.f32 %v39_v8, %v34_v1  ;;  %v53_v13 = vstv %s86_s25  ;;  %v67_v14 = vstv %s87_s26 }
  0x17   :  { %v54_v17 = vmul.f32 %v53_v13, %v48_v2  ;;  %v31_v18 = vmul.f32 %v29_v7, %v25_v4  ;;  %v41_v19 = vmul.f32 %v39_v8, %v35_v5  ;;  %v68_v24 = vmul.f32 %v67_v14, %v62_v3 }
  0x18   :  { %v44_v23 = vadd.f32 %v40_v12, %v30_v11  ;;  %v55_v25 = vmul.f32 %v53_v13, %v49_v6  ;;  %v32_v26 = vmul.f32 %v29_v7, %v26_v10  ;;  %v69_v29 = vmul.f32 %v67_v14, %v63_v9 }
  0x19   :  { %v45_v28 = vadd.f32 %v41_v19, %v31_v18  ;;  %v42_v30 = vmul.f32 %v39_v8, %v36_v15  ;;  %v56_v31 = vmul.f32 %v53_v13, %v50_v16  ;;  %v33_v34 = vmul.f32 %v29_v7, %v27_v20 }
  0x1a   :  { %v58_v33 = vadd.f32 %v54_v17, %v44_v23  ;;  %v43_v35 = vmul.f32 %v39_v8, %v37_v21  ;;  %v57_v36 = vmul.f32 %v53_v13, %v51_v22  ;;  %v70_v39 = vmul.f32 %v67_v14, %v64_v27 }
  0x1b   :  { %v59_v37 = vadd.f32 %v55_v25, %v45_v28  ;;  %v46_v38 = vadd.f32 %v42_v30, %v32_v26  ;;  %v71_v42 = vmul.f32 %v67_v14, %v65_v32 }
  0x1c   :  { %v72_v40 = vadd.f32 %v68_v24, %v58_v33  ;;  %v47_v41 = vadd.f32 %v43_v35, %v33_v34 }
  0x1d   :  { %v73_v43 = vadd.f32 %v69_v29, %v59_v37  ;;  %v60_v44 = vadd.f32 %v56_v31, %v46_v38 }
  0x1e   :  { %77 = vst.msk [vmem:[%s202_s5] sm:$0xff] %vm76_vm0, %v72_v40  ;;  %v61_v45 = vadd.f32 %v57_v36, %v47_v41 }
  0x1f   :  { %78 = vst.msk [vmem:[%s202_s5 + $0x8] sm:$0xff] %vm76_vm0, %v73_v43  ;;  %v74_v46 = vadd.f32 %v70_v39, %v60_v44 }
  0x20   :  { %v75_v47 = vadd.f32 %v71_v42, %v61_v45 }
  0x21   :  { %79 = vst.msk [vmem:[%s202_s5 + $0x10] sm:$0xff] %vm76_vm0, %v74_v46 }
  0x22   :  { %80 = vst.msk [vmem:[%s202_s5 + $0x18] sm:$0xff] %vm76_vm0, %v75_v47 }

</bundles_post_ra>
